<compile_context>
chip_gen: v5e
topology: v5e:2x2
jax: 0.10.0
libtpu: 0.0.40
codegen_flags: <defaults>
</compile_context>

<pallas_src>
import functools

import jax
import jax.numpy as jnp
from jax.experimental import pallas as pl
from jax.experimental.pallas import tpu as pltpu


def _round_up(x, m):
    return (x + m - 1) // m * m


def _compiler_params(dims, vmem_need):
    # Only raise the scoped-VMEM limit past the conservative 16 MiB default
    # when the estimate requires it, and never request more than 48 MiB so
    # v7x (64 MiB physical per TC) keeps headroom for Mosaic scratch.
    kwargs = dict(dimension_semantics=dims)
    if vmem_need > 16 * 1024 * 1024:
        kwargs["vmem_limit_bytes"] = int(min(vmem_need + (8 << 20), 48 << 20))
    return pltpu.CompilerParams(**kwargs)


# ---------------------------------------------------------------------------
# Pass 1 (grid over row tiles): row-wise L2 normalization (F.normalize, dim=1,
# eps=1e-12) with sqrt(1/temp) folded into the scale, emitting
#   z   : (T, Dp)  pre-scaled normalized rows (matmul dtype)
#   z^T : (Dp, T)  so pass 2 is a canonical (M,K)x(K,N) MXU matmul
#   pos : (T, 1)   rowwise dot with the +/-B partner row == pos_sim / temp
# ---------------------------------------------------------------------------
def _normalize_kernel(x_ref, xs_ref, z_ref, zt_ref, pos_ref, *, scale):
    eps2 = jnp.float32(1e-24)                     # eps^2 with eps = 1e-12
    s = jnp.float32(scale)                        # sqrt(1/temperature)

    x = x_ref[...].astype(jnp.float32)            # (T, Dp) rows of cat(xi, xj)
    xs = xs_ref[...].astype(jnp.float32)          # (T, Dp) rows of cat(xj, xi)

    # x * rsqrt(max(||x||^2, eps^2)) == x / max(||x||, eps); one EUP op, no div.
    inv = jax.lax.rsqrt(jnp.maximum(jnp.sum(x * x, axis=1, keepdims=True),
                                    eps2)) * s
    invs = jax.lax.rsqrt(jnp.maximum(jnp.sum(xs * xs, axis=1, keepdims=True),
                                     eps2)) * s
    z = x * inv                                   # (T, Dp) f32, scaled
    zs = xs * invs                                # partner rows, scaled

    # positive-pair similarity already divided by temperature (scale^2 = 1/temp)
    pos_ref[...] = jnp.sum(z * zs, axis=1, keepdims=True)

    zc = z.astype(z_ref.dtype)
    z_ref[...] = zc
    zt_ref[...] = zc.T                            # one XLU transpose per row tile


# ---------------------------------------------------------------------------
# Pass 2 (grid = (row_tiles, col_tiles), ("parallel", "arbitrary")):
# flash-style online reduction of sum_j exp(sim_ij / temp) over column tiles.
# sim arrives pre-scaled by 1/temp.  Masking (diagonal + padded columns) is
# gated to the few tiles that need it; row sums run on the MXU via a ones
# column so the saturated vector slots only carry the exp.
# ---------------------------------------------------------------------------
def _ntxent_kernel(z_ref, zt_ref, pos_ref, out_ref, denom_acc, *,
                   num_valid, tile):
    i = pl.program_id(0)
    j = pl.program_id(1)
    last_j = pl.num_programs(1) - 1

    @pl.when(j == 0)
    def _():
        denom_acc[...] = jnp.zeros_like(denom_acc)

    # Rows of z are unit-norm * sqrt(1/temp), so (T,Dp)@(Dp,T) == sim/temp.
    sim = jnp.dot(z_ref[...], zt_ref[...],
                  preferred_element_type=jnp.float32)        # (T, T) f32
    e = jnp.exp(sim)                                         # EUP
    ones = jnp.ones((tile, 1), jnp.float32)

    needs_mask = (i == j) | (j == last_j)

    @pl.when(jnp.logical_not(needs_mask))
    def _():
        # Off-diagonal, fully-valid tile: plain row-sum on the MXU.
        denom_acc[...] += jnp.dot(e, ones, preferred_element_type=jnp.float32)

    @pl.when(needs_mask)
    def _():
        # Diagonal tile (exclude self term) and/or last column tile (exclude
        # zero-padded columns, which would otherwise contribute exp(0) = 1).
        row_g = i * tile + jax.lax.broadcasted_iota(jnp.int32, (tile, 1), 0)
        col_g = j * tile + jax.lax.broadcasted_iota(jnp.int32, (1, tile), 1)
        valid = (col_g < num_valid) & (col_g != row_g)
        em = jnp.where(valid, e, 0.0)
        denom_acc[...] += jnp.dot(em, ones, preferred_element_type=jnp.float32)

    @pl.when(j == last_j)
    def _():
        # per-row loss: -log(exp(pos/temp) / denom) == log(denom) - pos/temp
        out_ref[...] = jnp.log(denom_acc[...]) - pos_ref[...]


def contrast_loss(x_i, x_j, *, temperature=0.5, tile=None,
                  matmul_dtype=jnp.bfloat16):
    """NT-Xent contrastive loss.  x_i, x_j: (B, D).  Returns scalar float32.

    matmul_dtype=jnp.bfloat16 (default) halves gram-matmul cost and the z^T
    DMA stream; normalization, exp and log always stay float32.  Pass
    matmul_dtype=jnp.float32 for bit-tighter similarity accuracy."""
    assert x_i.shape == x_j.shape and x_i.ndim == 2
    B, D = x_i.shape
    N = 2 * B

    # Lane-align the feature dim; pick an MXU-friendly tile (multiple of 128,
    # 512 for large N to amortize per-grid-step overhead).  Rows are padded
    # with exact zeros.
    Dp = _round_up(D, 128)
    if tile is None:
        tile = 512 if N >= 1024 else 256
    tile = max(128, _round_up(tile, 128))
    T = min(tile, _round_up(N, 128))
    N_pad = _round_up(N, T)
    n_tiles = N_pad // T

    pad = ((0, N_pad - N), (0, Dp - D))
    x = jnp.pad(jnp.concatenate([x_i, x_j], axis=0).astype(jnp.float32), pad)
    xs = jnp.pad(jnp.concatenate([x_j, x_i], axis=0).astype(jnp.float32), pad)

    itemsize = jnp.dtype(matmul_dtype).itemsize
    # VMEM estimates: double-buffered inputs/outputs + f32 temporaries.
    need1 = (2 * 2 * T * Dp * 4            # x, xs tiles (f32, double-buffered)
             + 2 * 2 * T * Dp * itemsize   # z, z^T tiles (double-buffered)
             + 6 * T * Dp * 4 + (1 << 20))
    need2 = (2 * 2 * T * Dp * itemsize     # z, z^T tiles (double-buffered)
             + 8 * T * T * 4 + (1 << 20))  # (T,T) f32 temporaries

    # ---- pass 1: normalize rows (scaled by sqrt(1/temp)), emit z, z^T, pos ----
    norm_kernel = functools.partial(
        _normalize_kernel, scale=float(temperature) ** -0.5)
    z, zt, pos = pl.pallas_call(
        norm_kernel,
        out_shape=(jax.ShapeDtypeStruct((N_pad, Dp), matmul_dtype),
                   jax.ShapeDtypeStruct((Dp, N_pad), matmul_dtype),
                   jax.ShapeDtypeStruct((N_pad, 1), jnp.float32)),
        grid_spec=pltpu.PrefetchScalarGridSpec(
            num_scalar_prefetch=0,
            grid=(n_tiles,),
            in_specs=[pl.BlockSpec((T, Dp), lambda i: (i, 0)),
                      pl.BlockSpec((T, Dp), lambda i: (i, 0))],
            out_specs=(pl.BlockSpec((T, Dp), lambda i: (i, 0)),
                       pl.BlockSpec((Dp, T), lambda i: (0, i)),
                       pl.BlockSpec((T, 1), lambda i: (i, 0)))),
        compiler_params=_compiler_params(("parallel",), need1),
    )(x, xs)

    # ---- pass 2: tiled similarity + online masked exp-sum reduction ----
    kernel = functools.partial(_ntxent_kernel, num_valid=N, tile=T)
    per_row = pl.pallas_call(
        kernel,
        out_shape=jax.ShapeDtypeStruct((N_pad, 1), jnp.float32),
        grid_spec=pltpu.PrefetchScalarGridSpec(
            num_scalar_prefetch=0,
            grid=(n_tiles, n_tiles),
            in_specs=[pl.BlockSpec((T, Dp), lambda i, j: (i, 0)),   # z rows
                      pl.BlockSpec((Dp, T), lambda i, j: (0, j)),   # z^T cols
                      pl.BlockSpec((T, 1), lambda i, j: (i, 0))],   # pos/temp
            out_specs=pl.BlockSpec((T, 1), lambda i, j: (i, 0)),
            scratch_shapes=[pltpu.VMEM((T, 1), jnp.float32)]),      # denom
        compiler_params=_compiler_params(("parallel", "arbitrary"), need2),
    )(z, zt, pos)

    # Tiny final reduction over the 2B per-row losses (kept outside the kernel
    # so the row-tile grid axis stays megacore-parallel).
    return jnp.sum(per_row[:N, 0]) / jnp.float32(N)


def _reference_loss(x_i, x_j, batch_size, temperature=0.5):
    # Pure-JAX mirror of the PyTorch forward, for a sanity check.
    eps = 1e-12
    zi = x_i / jnp.maximum(jnp.linalg.norm(x_i, axis=1, keepdims=True), eps)
    zj = x_j / jnp.maximum(jnp.linalg.norm(x_j, axis=1, keepdims=True), eps)
    z = jnp.concatenate([zi, zj], axis=0)
    sim = z @ z.T
    sim_ij = jnp.diagonal(sim, offset=batch_size)
    sim_ji = jnp.diagonal(sim, offset=-batch_size)
    pos = jnp.concatenate([sim_ij, sim_ji], axis=0)
    neg_mask = 1.0 - jnp.eye(2 * batch_size, dtype=jnp.float32)
    nom = jnp.exp(pos / temperature)
    denom = jnp.sum(neg_mask * jnp.exp(sim / temperature), axis=1)
    return jnp.sum(-jnp.log(nom / denom)) / (2 * batch_size)


if __name__ == "__main__":
    temperature = 0.5  # deterministic "temp" buffer value from __init__
    key = jax.random.PRNGKey(0)

    # Small shape consistent with the module (projection features per view).
    B, D = 4, 32
    k1, k2 = jax.random.split(key)
    x_i = jax.random.normal(k1, (B, D), dtype=jnp.float32)
    x_j = jax.random.normal(k2, (B, D), dtype=jnp.float32)
    loss = jax.block_until_ready(
        contrast_loss(x_i, x_j, temperature=temperature))
    ref = jax.block_until_ready(_reference_loss(x_i, x_j, B, temperature))
    assert jnp.allclose(loss, ref, rtol=3e-3, atol=3e-3), (loss, ref)

    # Second case exercising the multi-tile grid path: 2x2 tiles, row and
    # feature padding, unmasked off-diagonal tiles, masked diagonal and
    # last-column tiles.
    B2, D2 = 160, 96
    k3, k4 = jax.random.split(jax.random.PRNGKey(1))
    y_i = jax.random.normal(k3, (B2, D2), dtype=jnp.float32)
    y_j = jax.random.normal(k4, (B2, D2), dtype=jnp.float32)
    ref2 = jax.block_until_ready(_reference_loss(y_i, y_j, B2, temperature))

    loss2_bf16 = jax.block_until_ready(
        contrast_loss(y_i, y_j, temperature=temperature))           # bf16 z/z^T
    assert jnp.allclose(loss2_bf16, ref2, rtol=3e-3, atol=3e-3), (loss2_bf16, ref2)

    loss2_f32 = jax.block_until_ready(
        contrast_loss(y_i, y_j, temperature=temperature,
                      matmul_dtype=jnp.float32))                    # f32 path
    assert jnp.allclose(loss2_f32, ref2, rtol=1e-3, atol=1e-3), (loss2_f32, ref2)

    print("KERNEL_OK")
</pallas_src>

<mosaic_0001>
module attributes {stable_mosaic.version = 11 : i64} {
  func.func @_normalize_kernel(%arg0: i32, %arg1: memref<128x128xf32, #tpu.memory_space<vmem>>, %arg2: memref<128x128xf32, #tpu.memory_space<vmem>>, %arg3: memref<128x128xbf16, #tpu.memory_space<vmem>>, %arg4: memref<128x128xbf16, #tpu.memory_space<vmem>>, %arg5: memref<128x1xf32, #tpu.memory_space<vmem>>) attributes {dimension_semantics = [#tpu.dimension_semantics<parallel>], iteration_bounds = array<i64: 1>, scalar_prefetch = 0 : i64, scratch_operands = 0 : i64, tpu.core_type = #tpu.core_type<tc>, window_params = [{transform_indices = @transform_0, window_bounds = array<i64: 128, 128>}, {transform_indices = @transform_1, window_bounds = array<i64: 128, 128>}, {transform_indices = @transform_2, window_bounds = array<i64: 128, 128>}, {transform_indices = @transform_3, window_bounds = array<i64: 128, 128>}, {transform_indices = @transform_4, window_bounds = array<i64: 128, 1>}]} {
    %c0 = arith.constant 0 : index
    %c0_0 = arith.constant 0 : index
    %0 = vector.load %arg1[%c0, %c0_0] : memref<128x128xf32, #tpu.memory_space<vmem>>, vector<128x128xf32>
    %c0_1 = arith.constant 0 : index
    %c0_2 = arith.constant 0 : index
    %1 = vector.load %arg2[%c0_1, %c0_2] : memref<128x128xf32, #tpu.memory_space<vmem>>, vector<128x128xf32>
    %2 = arith.mulf %0, %0 : vector<128x128xf32>
    %cst = arith.constant dense<0.000000e+00> : vector<128xf32>
    %3 = vector.multi_reduction <add>, %2, %cst [1] : vector<128x128xf32> to vector<128xf32>
    %4 = vector.shape_cast %3 : vector<128xf32> to vector<128x1xf32>
    %cst_3 = arith.constant 1.000000e-24 : f32
    %5 = vector.broadcast %cst_3 : f32 to vector<128x1xf32>
    %6 = arith.maximumf %4, %5 : vector<128x1xf32>
    %7 = math.rsqrt %6 : vector<128x1xf32>
    %cst_4 = arith.constant 1.41421354 : f32
    %8 = vector.broadcast %cst_4 : f32 to vector<128x1xf32>
    %9 = arith.mulf %7, %8 : vector<128x1xf32>
    %10 = arith.mulf %1, %1 : vector<128x128xf32>
    %cst_5 = arith.constant dense<0.000000e+00> : vector<128xf32>
    %11 = vector.multi_reduction <add>, %10, %cst_5 [1] : vector<128x128xf32> to vector<128xf32>
    %12 = vector.shape_cast %11 : vector<128xf32> to vector<128x1xf32>
    %cst_6 = arith.constant 1.000000e-24 : f32
    %13 = vector.broadcast %cst_6 : f32 to vector<128x1xf32>
    %14 = arith.maximumf %12, %13 : vector<128x1xf32>
    %15 = math.rsqrt %14 : vector<128x1xf32>
    %cst_7 = arith.constant 1.41421354 : f32
    %16 = vector.broadcast %cst_7 : f32 to vector<128x1xf32>
    %17 = arith.mulf %15, %16 : vector<128x1xf32>
    %18 = vector.broadcast %9 : vector<128x1xf32> to vector<128x128xf32>
    %19 = arith.mulf %0, %18 : vector<128x128xf32>
    %20 = vector.broadcast %17 : vector<128x1xf32> to vector<128x128xf32>
    %21 = arith.mulf %1, %20 : vector<128x128xf32>
    %22 = arith.mulf %19, %21 : vector<128x128xf32>
    %cst_8 = arith.constant dense<0.000000e+00> : vector<128xf32>
    %23 = vector.multi_reduction <add>, %22, %cst_8 [1] : vector<128x128xf32> to vector<128xf32>
    %24 = vector.shape_cast %23 : vector<128xf32> to vector<128x1xf32>
    %c0_9 = arith.constant 0 : index
    %c0_10 = arith.constant 0 : index
    %25 = vector.load %arg5[%c0_9, %c0_10] : memref<128x1xf32, #tpu.memory_space<vmem>>, vector<128x1xf32>
    tpu.vector_store %arg5[%c0_9, %c0_10], %24 {strides = array<i32>} : memref<128x1xf32, #tpu.memory_space<vmem>>, vector<128x1xf32>,
    %26 = arith.truncf %19 : vector<128x128xf32> to vector<128x128xbf16>
    %c0_11 = arith.constant 0 : index
    %c0_12 = arith.constant 0 : index
    %27 = vector.load %arg3[%c0_11, %c0_12] : memref<128x128xbf16, #tpu.memory_space<vmem>>, vector<128x128xbf16>
    tpu.vector_store %arg3[%c0_11, %c0_12], %26 {strides = array<i32>} : memref<128x128xbf16, #tpu.memory_space<vmem>>, vector<128x128xbf16>,
    %28 = tpu.transpose %26, [1, 0] : vector<128x128xbf16> -> vector<128x128xbf16>
    %c0_13 = arith.constant 0 : index
    %c0_14 = arith.constant 0 : index
    %29 = vector.load %arg4[%c0_13, %c0_14] : memref<128x128xbf16, #tpu.memory_space<vmem>>, vector<128x128xbf16>
    tpu.vector_store %arg4[%c0_13, %c0_14], %28 {strides = array<i32>} : memref<128x128xbf16, #tpu.memory_space<vmem>>, vector<128x128xbf16>,
    return
  }
  func.func @transform_0(%arg0: i32) -> (i32, i32) {
    %c0_i32 = arith.constant 0 : i32
    %c0_i32_0 = arith.constant 0 : i32
    return %arg0, %c0_i32 : i32, i32
  }
  func.func @transform_1(%arg0: i32) -> (i32, i32) {
    %c0_i32 = arith.constant 0 : i32
    %c0_i32_0 = arith.constant 0 : i32
    return %arg0, %c0_i32 : i32, i32
  }
  func.func @transform_2(%arg0: i32) -> (i32, i32) {
    %c0_i32 = arith.constant 0 : i32
    %c0_i32_0 = arith.constant 0 : i32
    return %arg0, %c0_i32 : i32, i32
  }
  func.func @transform_3(%arg0: i32) -> (i32, i32) {
    %c0_i32 = arith.constant 0 : i32
    %c0_i32_0 = arith.constant 0 : i32
    return %c0_i32, %arg0 : i32, i32
  }
  func.func @transform_4(%arg0: i32) -> (i32, i32) {
    %c0_i32 = arith.constant 0 : i32
    %c0_i32_0 = arith.constant 0 : i32
    return %arg0, %c0_i32 : i32, i32
  }
}

</mosaic_0001>

<bundles_post_ra>
// kernel: tpu_custom_call.1
= control target key start
LH: loop header
LB: loop body
LE: loop exit
PB: predicated region body
PF: predicated region fallthrough
CT: control target
= control target key end

     0   :  { %10 = vsyncpa [#allocation3], 0  ;;  %s2149_s0 = inlined_call_operand.hbm [shape: f32[128,128], index: 0, kind: input, shape index: {}]   ;;  %s2150_s1 = inlined_call_operand.hbm [shape: f32[128,128], index: 1, kind: input, shape index: {}]   ;;  %s2151_s2 = inlined_call_operand.hbm [shape: bf16[128,128], index: 2, kind: output, shape index: {0}]   ;;  %s2152_s3 = inlined_call_operand.hbm [shape: bf16[128,128], index: 3, kind: output, shape index: {1}]   ;;  %s2153_s4 = inlined_call_operand.vmem [shape: f32[128,1], index: 4, kind: output, shape index: {2}]  }
   0x1   :  { %11 = vsyncpa [#allocation6], 0 }
   0x2   :  { %12 = vsyncpa [#allocation4], 0 }
   0x3   :  { %13 = vsyncpa [#allocation9], 0  ;;  %s18_s17 = sshll.u32 %s2149_s0, 4  ;;  %s1099_s18 = smov [#allocation2]   ;;  %s19_s17 = int_to_ptr.hbm [resolvable:$true] %s18_s17 }
   0x4   :  { %s20_s19 = sshll.u32 %s1099_s18, 4  ;;  %s31_s22 = sshll.u32 %s2150_s1, 4  ;;  %s21_s19 = int_to_ptr.vmem [resolvable:$true] %s20_s19  ;;  %s32_s22 = int_to_ptr.hbm [resolvable:$true] %s31_s22 }
   0x5   :  { %s1100_s23 = smov 128   ;;  %s1101_s24 = smov 8  }
   0x6   :  { %26 = dma.hbm_to_vmem [thread:$0]  %s19_s17, 2048, %s21_s19, [#allocation3], %s1100_s23, %s1100_s23, %s1101_s24  }
   0x7   :  { %s1102_s25 = smov [#allocation5]  }
   0x8   :  { %s33_s26 = sshll.u32 %s1102_s25, 4  ;;  %s34_s26 = int_to_ptr.vmem [resolvable:$true] %s33_s26 }
   0x9   :  { %39 = dma.hbm_to_vmem [thread:$0]  %s32_s22, 2048, %s34_s26, [#allocation6], %s1100_s23, %s1100_s23, %s1101_s24  }
   0xa   :  { %1091 = dma.done.wait [#allocation3], 2048  }
   0xb   :  { %1092 = vsyncadd [#allocation3], 4294965248 }
   0xc   :  { %1093 = dma.done.wait [#allocation6], 2048  }
   0xd   :  { %1094 = vsyncadd [#allocation6], 4294965248  ;;  %v1138_v0 = vld [vmem:[#allocation2 + $0x20] sm:$0xff]  ;;  %v1140_v1 = vld [vmem:[#allocation2 + $0x10] sm:$0xff]  ;;  %s831_s29 = sshll.u32 %s2151_s2, 4  ;;  %s1103_s30 = smov [#allocation7]   ;;  %s832_s29 = int_to_ptr.hbm [resolvable:$true] %s831_s29 }
   0xe   :  { %v1142_v2 = vld [vmem:[#allocation2] sm:$0xff]  ;;  %v84_v3 = vmul.f32 %v1138_v0, %v1138_v0  ;;  %v82_v4 = vmul.f32 %v1140_v1, %v1140_v1  ;;  %v1150_v6 = vld [vmem:[#allocation2 + $0x28] sm:$0xff]  ;;  %v1152_v7 = vld [vmem:[#allocation2 + $0x18] sm:$0xff]  ;;  %s829_s5 = sshll.u32 %s1103_s30, 4  ;;  %s1104_s6 = smov 64   ;;  %s830_s5 = int_to_ptr.vmem [resolvable:$true] %s829_s5 }
   0xf   :  { %v80_v5 = vmul.f32 %v1142_v2, %v1142_v2  ;;  %2176 = vst [vmem:[#allocation14_spill] sm:$0xff] %v1150_v6  ;;  %v1154_v8 = vld [vmem:[#allocation2 + $0x8] sm:$0xff]  ;;  %v85_v9 = vmul.f32 %v1150_v6, %v1150_v6  ;;  %v83_v10 = vmul.f32 %v1152_v7, %v1152_v7  ;;  %v56_v12 = vld [vmem:[#allocation2 + $0x40] sm:$0xff]  ;;  %v1162_v13 = vld [vmem:[#allocation2 + $0x38] sm:$0xff]  ;;  %s1105_s7 = smov 4   ;;  %s1106_s2 = smov [#allocation8]  }
  0x10   :  { %104 = vadd.xlane.f32.xlu2 %v84_v3  ;;  %100 = vadd.xlane.f32.xlu1 %v82_v4  ;;  %v81_v11 = vmul.f32 %v1154_v8, %v1154_v8  ;;  %v1164_v14 = vld [vmem:[#allocation2 + $0x30] sm:$0xff]  ;;  %v88_v15 = vmul.f32 %v56_v12, %v56_v12  ;;  %v87_v16 = vmul.f32 %v1162_v13, %v1162_v13  ;;  %v59_v18 = vld [vmem:[#allocation2 + $0x58] sm:$0xff]  ;;  %v57_v20 = vld [vmem:[#allocation2 + $0x48] sm:$0xff]  ;;  %s844_s12 = sshll.u32 %s2152_s3, 4  ;;  %s845_s12 = int_to_ptr.hbm [resolvable:$true] %s844_s12 }
  0x11   :  { %96 = vadd.xlane.f32.xlu0 %v80_v5  ;;  %2177 = vst [vmem:[#allocation15_spill] sm:$0xff] %v1164_v14  ;;  %v86_v17 = vmul.f32 %v1164_v14, %v1164_v14  ;;  %v1170_v19 = vld [vmem:[#allocation2 + $0x50] sm:$0xff]  ;;  %v91_v21 = vmul.f32 %v59_v18, %v59_v18  ;;  %v89_v23 = vmul.f32 %v57_v20, %v57_v20  ;;  %v61_v25 = vld [vmem:[#allocation2 + $0x68] sm:$0xff]  ;;  %v60_v26 = vld [vmem:[#allocation2 + $0x60] sm:$0xff] }
  0x12   :  { %2178 = vst [vmem:[#allocation16_spill] sm:$0xff] %v1170_v19  ;;  %v90_v22 = vmul.f32 %v1170_v19, %v1170_v19  ;;  %v62_v24 = vld [vmem:[#allocation2 + $0x70] sm:$0xff]  ;;  %v93_v28 = vmul.f32 %v61_v25, %v61_v25  ;;  %v92_v29 = vmul.f32 %v60_v26, %v60_v26  ;;  %v1174_v30 = vld [vmem:[#allocation5 + $0x8] sm:$0xff]  ;;  %v1176_v31 = vld [vmem:[#allocation5] sm:$0xff] }
  0x13   :  { %v94_v27 = vmul.f32 %v62_v24, %v62_v24  ;;  %v63_v32 = vld [vmem:[#allocation2 + $0x78] sm:$0xff]  ;;  %v321_v33 = vmul.f32 %v1174_v30, %v1174_v30  ;;  %v320_v34 = vmul.f32 %v1176_v31, %v1176_v31  ;;  %v1182_v36 = vld [vmem:[#allocation5 + $0x20] sm:$0xff]  ;;  %v1186_v38 = vld [vmem:[#allocation5 + $0x10] sm:$0xff] }
  0x14   :  { %v95_v35 = vmul.f32 %v63_v32, %v63_v32  ;;  %v1184_v37 = vld [vmem:[#allocation5 + $0x18] sm:$0xff]  ;;  %v324_v39 = vmul.f32 %v1182_v36, %v1182_v36  ;;  %v322_v41 = vmul.f32 %v1186_v38, %v1186_v38  ;;  %v1196_v43 = vld [vmem:[#allocation5 + $0x30] sm:$0xff]  ;;  %v1198_v44 = vld [vmem:[#allocation5 + $0x28] sm:$0xff] }
  0x15   :  { %v323_v40 = vmul.f32 %v1184_v37, %v1184_v37  ;;  %v1194_v42 = vld [vmem:[#allocation5 + $0x38] sm:$0xff]  ;;  %2179 = vst [vmem:[#allocation17_spill] sm:$0xff] %v1196_v43  ;;  %v326_v46 = vmul.f32 %v1196_v43, %v1196_v43  ;;  %v325_v47 = vmul.f32 %v1198_v44, %v1198_v44  ;;  %v1206_v48 = vld [vmem:[#allocation5 + $0x50] sm:$0xff]  ;;  %v1208_v49 = vld [vmem:[#allocation5 + $0x48] sm:$0xff] }
  0x16   :  { %2180 = vst [vmem:[#allocation18_spill] sm:$0xff] %v1198_v44  ;;  %v327_v45 = vmul.f32 %v1194_v42, %v1194_v42  ;;  %v1210_v50 = vld [vmem:[#allocation5 + $0x40] sm:$0xff]  ;;  %v330_v51 = vmul.f32 %v1206_v48, %v1206_v48  ;;  %v329_v52 = vmul.f32 %v1208_v49, %v1208_v49  ;;  %v1218_v54 = vld [vmem:[#allocation5 + $0x68] sm:$0xff]  ;;  %v1222_v56 = vld [vmem:[#allocation5 + $0x58] sm:$0xff] }
  0x17   :  { %2181 = vst [vmem:[#allocation19_spill] sm:$0xff] %v1206_v48  ;;  %v328_v53 = vmul.f32 %v1210_v50, %v1210_v50  ;;  %v1220_v55 = vld [vmem:[#allocation5 + $0x60] sm:$0xff]  ;;  %v333_v57 = vmul.f32 %v1218_v54, %v1218_v54  ;;  %v331_v59 = vmul.f32 %v1222_v56, %v1222_v56  ;;  %v79_v60 = vld [vmem:[#allocation5 + $0x78] sm:$0xff] }
  0x18   :  { %106 = vadd.xlane.f32.xlu2 %v85_v9  ;;  %102 = vadd.xlane.f32.xlu1 %v83_v10  ;;  %2182 = vst [vmem:[#allocation20_spill] sm:$0xff] %v1208_v49  ;;  %v332_v58 = vmul.f32 %v1220_v55, %v1220_v55  ;;  %v335_v61 = vmul.f32 %v79_v60, %v79_v60 }
  0x19   :  { %98 = vadd.xlane.f32.xlu0 %v81_v11  ;;  %2183 = vst [vmem:[#allocation21_spill] sm:$0xff] %v1210_v50 }
  0x1a   :  { %2184 = vst [vmem:[#allocation22_spill] sm:$0xff] %v1218_v54 }
  0x1b   :  { %2185 = vst [vmem:[#allocation23_spill] sm:$0xff] %v1220_v55 }
  0x1c   :  { %2186 = vst [vmem:[#allocation24_spill] sm:$0xff] %v1222_v56 }
  0x20   :  { %112 = vadd.xlane.f32.xlu2 %v88_v15  ;;  %110 = vadd.xlane.f32.xlu1 %v87_v16 }
  0x21   :  { %108 = vadd.xlane.f32.xlu0 %v86_v17 }
  0x28   :  { %118 = vadd.xlane.f32.xlu2 %v91_v21  ;;  %116 = vadd.xlane.f32.xlu1 %v90_v22 }
  0x29   :  { %114 = vadd.xlane.f32.xlu0 %v89_v23 }
  0x30   :  { %124 = vadd.xlane.f32.xlu2 %v94_v27  ;;  %122 = vadd.xlane.f32.xlu1 %v93_v28 }
  0x31   :  { %120 = vadd.xlane.f32.xlu0 %v92_v29 }
  0x38   :  { %338 = vadd.xlane.f32.xlu2 %v321_v33  ;;  %336 = vadd.xlane.f32.xlu1 %v320_v34 }
  0x39   :  { %126 = vadd.xlane.f32.xlu0 %v95_v35 }
  0x40   :  { %344 = vadd.xlane.f32.xlu2 %v324_v39  ;;  %342 = vadd.xlane.f32.xlu1 %v323_v40 }
  0x41   :  { %340 = vadd.xlane.f32.xlu0 %v322_v41 }
  0x48   :  { %350 = vadd.xlane.f32.xlu2 %v327_v45  ;;  %348 = vadd.xlane.f32.xlu1 %v326_v46 }
  0x49   :  { %346 = vadd.xlane.f32.xlu0 %v325_v47 }
  0x50   :  { %356 = vadd.xlane.f32.xlu2 %v330_v51  ;;  %354 = vadd.xlane.f32.xlu1 %v329_v52 }
  0x51   :  { %352 = vadd.xlane.f32.xlu0 %v328_v53 }
  0x58   :  { %362 = vadd.xlane.f32.xlu2 %v333_v57  ;;  %360 = vadd.xlane.f32.xlu1 %v332_v58 }
  0x59   :  { %358 = vadd.xlane.f32.xlu0 %v331_v59 }
  0x60   :  { %366 = vadd.xlane.f32.xlu1 %v335_v61 }
  0x83   :  { %v105_v62 = vpop.xlane.xlu2 %104  ;;  %v101_v63 = vpop.xlane.xlu1 %100 }
  0x84   :  { %v97_v3 = vpop.xlane.xlu0 %96  ;;  %v1234_v16 = vmax.f32 %v101_v63, 1e-24  ;;  %v1238_v18 = vmax.f32 %v105_v62, 1e-24 }
  0x85   :  { %v128_v4 = vmax.f32 %v97_v3, 1e-24 }
  0x86   :  { %vm170_vm6 = vweird.f32 %v1234_v16  ;;  %vm190_vm11 = vweird.f32 %v1238_v18 }
  0x87   :  { %922 = vrsqrt.f32 %v128_v4  ;;  %vm150_vm2 = vweird.f32 %v128_v4 }
  0x8b   :  { %v107_v5 = vpop.xlane.xlu2 %106  ;;  %v103_v9 = vpop.xlane.xlu1 %102 }
  0x8c   :  { %v1230_v10 = vmax.f32 %v103_v9, 1e-24  ;;  %v99_v11 = vpop.xlane.xlu0 %98  ;;  %v1242_v21 = vmax.f32 %v107_v5, 1e-24 }
  0x8d   :  { %v129_v12 = vmax.f32 %v99_v11, 1e-24  ;;  %v1232_v15 = vpop.eup %922 }
  0x8e   :  { %v145_v17 = vmul.f32 %v1232_v15, %v128_v4  ;;  %924 = vrsqrt.f32 %v1230_v10  ;;  %vm151_vm0 = vweird.f32 %v1232_v15  ;;  %vm180_vm7 = vweird.f32 %v1230_v10 }
  0x8f   :  { %926 = vrsqrt.f32 %v129_v12  ;;  %vm1280_vm3 = vmor %vm150_vm2, %vm151_vm0  ;;  %vm160_vm4 = vweird.f32 %v129_v12 }
  0x90   :  { %v146_v20 = vmul.f32 %v1232_v15, %v145_v17  ;;  %928 = vrsqrt.f32 %v1234_v16 }
  0x91   :  { %930 = vrsqrt.f32 %v1238_v18 }
  0x92   :  { %v147_v24 = vmul.f32 0.5, %v146_v20  ;;  %932 = vrsqrt.f32 %v1242_v21 }
  0x93   :  { %v113_v22 = vpop.xlane.xlu2 %112  ;;  %v111_v23 = vpop.xlane.xlu1 %110 }
  0x94   :  { %v109_v25 = vpop.xlane.xlu0 %108  ;;  %v1244_v26 = vpop.eup %924  ;;  %v1247_v27 = vmax.f32 %v113_v22, 1e-24  ;;  %v1249_v29 = vmax.f32 %v111_v23, 1e-24  ;;  %v148_v34 = vsub.f32 1.5, %v147_v24  ;;  %v78_v22 = vld [vmem:[#allocation5 + $0x70] sm:$0xff] }
  0x95   :  { %v927_v28 = vpop.eup %926  ;;  %v175_v35 = vmul.f32 %v1244_v26, %v1230_v10  ;;  %v1257_v40 = vmax.f32 %v109_v25, 1e-24  ;;  %vm181_vm8 = vweird.f32 %v1244_v26 }
  0x96   :  { %v155_v32 = vmul.f32 %v927_v28, %v129_v12  ;;  %v1252_v33 = vpop.eup %928  ;;  %934 = vrsqrt.f32 %v1247_v27  ;;  %v149_v52 = vmul.f32 %v1232_v15, %v148_v34  ;;  %vm161_vm1 = vweird.f32 %v927_v28  ;;  %vm1343_vm9 = vmor %vm180_vm7, %vm181_vm8 }
  0x97   :  { %936 = vrsqrt.f32 %v1249_v29  ;;  %v1260_v41 = vpop.eup %930  ;;  %v165_v45 = vmul.f32 %v1252_v33, %v1234_v16  ;;  %v176_v59 = vmul.f32 %v1244_v26, %v175_v35  ;;  %vm1288_vm5 = vmor %vm160_vm4, %vm161_vm1  ;;  %v334_v12 = vmul.f32 %v78_v22, %v78_v22 }
  0x98   :  { %v156_v39 = vmul.f32 %v927_v28, %v155_v32  ;;  %938 = vrsqrt.f32 %v1257_v40  ;;  %v1269_v58 = vpop.eup %932  ;;  %v185_v62 = vmul.f32 %v1260_v41, %v1238_v18  ;;  %v153_v23 = vsel %vm1280_vm3, %v1232_v15, %v149_v52 }
  0x99   :  { %v166_v3 = vmul.f32 %v1252_v33, %v165_v45  ;;  %v195_v17 = vmul.f32 %v1269_v58, %v1242_v21  ;;  %v177_v25 = vmul.f32 0.5, %v176_v59  ;;  %364 = vadd.xlane.f32.xlu0 %v334_v12  ;;  %vm171_vm10 = vweird.f32 %v1252_v33 }
  0x9a   :  { %v157_v46 = vmul.f32 0.5, %v156_v39  ;;  %v186_v34 = vmul.f32 %v1260_v41, %v185_v62  ;;  %vm1370_vm12 = vmor %vm170_vm6, %vm171_vm10  ;;  %vm191_vm13 = vweird.f32 %v1260_v41  ;;  %vm220_vm15 = vweird.f32 %v1249_v29 }
  0x9b   :  { %v119_v47 = vpop.xlane.xlu2 %118  ;;  %v117_v51 = vpop.xlane.xlu1 %116  ;;  %v167_v39 = vmul.f32 0.5, %v166_v3  ;;  %v178_v62 = vsub.f32 1.5, %v177_v25  ;;  %vm1396_vm14 = vmor %vm190_vm11, %vm191_vm13  ;;  %vm210_vm3 = vweird.f32 %v1257_v40 }
  0x9c   :  { %v1267_v53 = vmax.f32 %v119_v47, 1e-24  ;;  %v115_v57 = vpop.xlane.xlu0 %114  ;;  %v158_v60 = vsub.f32 1.5, %v157_v46  ;;  %v1272_v61 = vmax.f32 %v117_v51, 1e-24  ;;  %v1277_v63 = vpop.eup %934 }
  0x9d   :  { %v1284_v11 = vpop.eup %936  ;;  %v1292_v4 = vmax.f32 %v115_v57, 1e-24  ;;  %v225_v35 = vmul.f32 %v1277_v63, %v1247_v27  ;;  %v304_v57 = vmul.f32 1.4142135, %v153_v23  ;;  %v168_v12 = vsub.f32 1.5, %v167_v39 }
  0x9e   :  { %940 = vrsqrt.f32 %v1267_v53  ;;  %v159_v9 = vmul.f32 %v927_v28, %v158_v60  ;;  %v1297_v24 = vpop.eup %938  ;;  %v215_v15 = vmul.f32 %v1284_v11, %v1249_v29  ;;  %v196_v60 = vmul.f32 %v1269_v58, %v195_v17 }
  0x9f   :  { %942 = vrsqrt.f32 %v1272_v61  ;;  %v205_v45 = vmul.f32 %v1297_v24, %v1257_v40  ;;  %v226_v20 = vmul.f32 %v1277_v63, %v225_v35  ;;  %v179_v39 = vmul.f32 %v1244_v26, %v178_v62 }
  0xa0   :  { %v163_v32 = vsel %vm1288_vm5, %v927_v28, %v159_v9  ;;  %944 = vrsqrt.f32 %v1292_v4  ;;  %v187_v9 = vmul.f32 0.5, %v186_v34  ;;  %v216_v17 = vmul.f32 %v1284_v11, %v215_v15 }
  0xa1   :  { %v305_v59 = vmul.f32 1.4142135, %v163_v32  ;;  %v206_v23 = vmul.f32 %v1297_v24, %v205_v45  ;;  %v1333_v34 = vmul.f32 %v304_v57, %v1142_v2  ;;  %v227_v45 = vmul.f32 0.5, %v226_v20 }
  0xa2   :  { %v188_v62 = vsub.f32 1.5, %v187_v9  ;;  %v169_v55 = vmul.f32 %v1252_v33, %v168_v12  ;;  %vm221_vm0 = vweird.f32 %v1284_v11  ;;  %vm211_vm1 = vweird.f32 %v1297_v24 }
  0xa3   :  { %v125_v46 = vpop.xlane.xlu2 %124  ;;  %v123_v47 = vpop.xlane.xlu1 %122  ;;  %2193 = vst [vmem:[#allocation27_spill] sm:$0xff] %v1333_v34  ;;  %v1336_v35 = vmul.f32 %v305_v59, %v1154_v8  ;;  %v207_v57 = vmul.f32 0.5, %v206_v23  ;;  %vm1479_vm6 = vmor %vm220_vm15, %vm221_vm0 }
  0xa4   :  { %v1310_v51 = vpop.eup %940  ;;  %v1312_v28 = vmax.f32 %v125_v46, 1e-24  ;;  %v121_v52 = vpop.xlane.xlu0 %120  ;;  %v1317_v5 = vmax.f32 %v123_v47, 1e-24  ;;  %v197_v46 = vmul.f32 0.5, %v196_v60  ;;  %v189_v16 = vmul.f32 %v1260_v41, %v188_v62 }
  0xa5   :  { %v255_v3 = vmul.f32 %v1310_v51, %v1267_v53  ;;  %v1322_v22 = vpop.eup %942  ;;  %v1330_v32 = vmax.f32 %v121_v52, 1e-24  ;;  %v870_v8 = vpack.c.bf16 %v1336_v35, %v1333_v34  ;;  %v217_v52 = vmul.f32 0.5, %v216_v17 }
  0xa6   :  { %2191 = vst [vmem:[#allocation25_spill] sm:$0xff] %v1312_v28  ;;  %v1327_v25 = vpop.eup %944  ;;  %946 = vrsqrt.f32 %v1312_v28  ;;  %v245_v2 = vmul.f32 %v1322_v22, %v1272_v61  ;;  %v198_v54 = vsub.f32 1.5, %v197_v46  ;;  %v183_v17 = vsel %vm1343_vm9, %v1244_v26, %v179_v39  ;;  %vm1512_vm9 = vmor %vm210_vm3, %vm211_vm1 }
  0xa7   :  { %2192 = vst [vmem:[#allocation26_spill] sm:$0xff] %v1330_v32  ;;  %v256_v47 = vmul.f32 %v1310_v51, %v255_v3  ;;  %948 = vrsqrt.f32 %v1317_v5  ;;  %v235_v10 = vmul.f32 %v1327_v25, %v1292_v4  ;;  %v218_v26 = vsub.f32 1.5, %v217_v52 }
  0xa8   :  { %950 = vrsqrt.f32 %v1330_v32  ;;  %871 = vst [vmem:[#allocation7] sm:$0xff] %v870_v8   ;;  %v228_v8 = vsub.f32 1.5, %v227_v45  ;;  %v246_v12 = vmul.f32 %v1322_v22, %v245_v2  ;;  %v208_v39 = vsub.f32 1.5, %v207_v57 }
  0xa9   :  { %v257_v50 = vmul.f32 0.5, %v256_v47  ;;  %v236_v47 = vmul.f32 %v1327_v25, %v235_v10  ;;  %v307_v45 = vmul.f32 1.4142135, %v183_v17  ;;  %v1387_v2 = vmul.f32 %v1269_v58, %v198_v54 }
  0xaa   :  { %v173_v52 = vsel %vm1370_vm12, %v1252_v33, %v169_v55  ;;  %v1409_v55 = vmul.f32 %v1284_v11, %v218_v26  ;;  %v1412_v18 = vmul.f32 %v1297_v24, %v208_v39  ;;  %vm201_vm3 = vweird.f32 %v1269_v58 }
  0xab   :  { %v339_v59 = vpop.xlane.xlu2 %338  ;;  %v337_v60 = vpop.xlane.xlu1 %336  ;;  %v237_v33 = vmul.f32 0.5, %v236_v47  ;;  %v1423_v48 = vmul.f32 %v307_v45, %v1152_v7  ;;  %v306_v26 = vmul.f32 1.4142135, %v173_v52 }
  0xac   :  { %v1355_v3 = vmax.f32 %v339_v59, 1e-24  ;;  %v1357_v20 = vmax.f32 %v337_v60, 1e-24  ;;  %v127_v56 = vpop.xlane.xlu0 %126  ;;  %v1363_v23 = vpop.eup %946  ;;  %v258_v60 = vsub.f32 1.5, %v257_v50  ;;  %v247_v50 = vmul.f32 0.5, %v246_v12 }
  0xad   :  { %2196 = vst [vmem:[#allocation28_spill] sm:$0xff] %v1363_v23  ;;  %v1376_v46 = vpop.eup %948  ;;  %v1384_v59 = vmax.f32 %v127_v56, 1e-24  ;;  %v285_v49 = vmul.f32 %v1363_v23, %v1312_v28  ;;  %v1401_v56 = vmul.f32 %v1277_v63, %v228_v8  ;;  %v238_v45 = vsub.f32 1.5, %v237_v33 }
  0xae   :  { %952 = vrsqrt.f32 %v1355_v3  ;;  %v1380_v15 = vpop.eup %950  ;;  %v275_v54 = vmul.f32 %v1376_v46, %v1317_v5  ;;  %v1427_v39 = vmul.f32 %v1310_v51, %v258_v60  ;;  %v248_v19 = vsub.f32 1.5, %v247_v50 }
  0xaf   :  { %954 = vrsqrt.f32 %v1357_v20  ;;  %2199 = vst [vmem:[#allocation29_spill] sm:$0xff] %v1384_v59  ;;  %v265_v10 = vmul.f32 %v1380_v15, %v1330_v32  ;;  %v286_v47 = vmul.f32 %v1363_v23, %v285_v49  ;;  %vm400_vm2 = vweird.f32 %v1355_v3 }
  0xb0   :  { %2202 = vst [vmem:[#allocation30_spill] sm:$0xff] %v1401_v56  ;;  %956 = vrsqrt.f32 %v1384_v59  ;;  %v276_v7 = vmul.f32 %v1376_v46, %v275_v54  ;;  %vm390_vm4 = vweird.f32 %v1357_v20  ;;  %v1452_v57 = vmul.f32 %v306_v26, %v1140_v1 }
  0xb1   :  { %2203 = vst [vmem:[#allocation31_spill] sm:$0xff] %v1427_v39  ;;  %v266_v49 = vmul.f32 %v1380_v15, %v265_v10  ;;  %v1454_v50 = vmul.f32 0.5, %v286_v47  ;;  %v1466_v1 = vmul.f32 %v1327_v25, %v238_v45 }
  0xb2   :  { %v277_v10 = vmul.f32 0.5, %v276_v7  ;;  %v875_v23 = vpack.c.bf16 %v1423_v48, %v1452_v57 }
  0xb3   :  { %v345_v62 = vpop.xlane.xlu2 %344  ;;  %v343_v17 = vpop.xlane.xlu1 %342  ;;  %2204 = vst [vmem:[#allocation32_spill] sm:$0xff] %v1454_v50  ;;  %v267_v26 = vmul.f32 0.5, %v266_v49 }
  0xb4   :  { %v1416_v9 = vpop.eup %952  ;;  %v1418_v8 = vmax.f32 %v345_v62, 1e-24  ;;  %v1420_v12 = vmax.f32 %v343_v17, 1e-24  ;;  %v341_v28 = vpop.xlane.xlu0 %340  ;;  %v193_v62 = vsel %vm1396_vm14, %v1260_v41, %v189_v16  ;;  %2206 = vst [vmem:[#allocation34_spill] sm:$0xff] %v1466_v1 }
  0xb5   :  { %v395_v56 = vmul.f32 %v1416_v9, %v1355_v3  ;;  %v1435_v17 = vpop.eup %954  ;;  %v1449_v16 = vmax.f32 %v341_v28, 1e-24  ;;  %v1463_v28 = vmul.f32 %v1322_v22, %v248_v19  ;;  %907 = vst [vmem:[#allocation7 + $0x8] sm:$0xff] %v875_v23   ;;  %v278_v23 = vsub.f32 1.5, %v277_v10 }
  0xb6   :  { %958 = vrsqrt.f32 %v1418_v8  ;;  %v385_v52 = vmul.f32 %v1435_v17, %v1357_v20  ;;  %v1445_v41 = vpop.eup %956  ;;  %vm391_vm5 = vweird.f32 %v1435_v17  ;;  %vm401_vm7 = vweird.f32 %v1416_v9 }
  0xb7   :  { %v396_v60 = vmul.f32 %v1416_v9, %v395_v56  ;;  %960 = vrsqrt.f32 %v1420_v12  ;;  %v308_v56 = vmul.f32 1.4142135, %v193_v62  ;;  %v295_v39 = vmul.f32 %v1445_v41, %v1384_v59  ;;  %2205 = vst [vmem:[#allocation33_spill] sm:$0xff] %v1463_v28  ;;  %vm1499_vm8 = vmor %vm390_vm4, %vm391_vm5 }
  0xb8   :  { %v386_v33 = vmul.f32 %v1435_v17, %v385_v52  ;;  %962 = vrsqrt.f32 %v1449_v16  ;;  %vm1526_vm10 = vmor %vm400_vm2, %vm401_vm7  ;;  %vm420_vm11 = vweird.f32 %v1420_v12  ;;  %vm430_vm12 = vweird.f32 %v1418_v8 }
  0xb9   :  { %v397_v54 = vmul.f32 0.5, %v396_v60  ;;  %v296_v29 = vmul.f32 %v1445_v41, %v295_v39  ;;  %vm410_vm0 = vweird.f32 %v1449_v16  ;;  %vm200_vm2 = vweird.f32 %v1242_v21 }
  0xba   :  { %v387_v47 = vmul.f32 0.5, %v386_v33  ;;  %v1487_v33 = vmul.f32 %v308_v56, %v1138_v0 }
  0xbb   :  { %v351_v60 = vpop.xlane.xlu2 %350  ;;  %v349_v52 = vpop.xlane.xlu1 %348  ;;  %v398_v7 = vsub.f32 1.5, %v397_v54  ;;  %v297_v3 = vmul.f32 0.5, %v296_v29 }
  0xbc   :  { %v1468_v62 = vpop.eup %958  ;;  %v1471_v59 = vmax.f32 %v351_v60, 1e-24  ;;  %v1473_v44 = vmax.f32 %v349_v52, 1e-24  ;;  %v347_v6 = vpop.xlane.xlu0 %346  ;;  %v388_v49 = vsub.f32 1.5, %v387_v47  ;;  %v268_v52 = vsub.f32 1.5, %v267_v26 }
  0xbd   :  { %v425_v54 = vmul.f32 %v1468_v62, %v1418_v8  ;;  %v1489_v60 = vpop.eup %960  ;;  %v399_v20 = vmul.f32 %v1416_v9, %v398_v7  ;;  %v1518_v26 = vmax.f32 %v347_v6, 1e-24  ;;  %vm431_vm13 = vweird.f32 %v1468_v62 }
  0xbe   :  { %964 = vrsqrt.f32 %v1471_v59  ;;  %v389_v1 = vmul.f32 %v1435_v17, %v388_v49  ;;  %v415_v56 = vmul.f32 %v1489_v60, %v1420_v12  ;;  %v1506_v10 = vpop.eup %962  ;;  %v223_v49 = vsel %vm1479_vm6, %v1284_v11, %v1409_v55  ;;  %vm1613_vm4 = vmor %vm430_vm12, %vm431_vm13 }
  0xbf   :  { %v426_v0 = vmul.f32 %v1468_v62, %v425_v54  ;;  %966 = vrsqrt.f32 %v1473_v44  ;;  %v405_v7 = vmul.f32 %v1506_v10, %v1449_v16  ;;  %v1539_v11 = vmul.f32 %v1376_v46, %v278_v23 }
  0xc0   :  { %v416_v40 = vmul.f32 %v1489_v60, %v415_v56  ;;  %968 = vrsqrt.f32 %v1518_v26  ;;  %v393_v55 = vsel %vm1499_vm8, %v1435_v17, %v389_v1  ;;  %v1547_v19 = vmul.f32 %v1380_v15, %v268_v52 }
  0xc1   :  { %2215 = vst [vmem:[#allocation35_spill] sm:$0xff] %v1539_v11  ;;  %v427_v56 = vmul.f32 0.5, %v426_v0  ;;  %v406_v50 = vmul.f32 %v1506_v10, %v405_v7  ;;  %v544_v14 = vmul.f32 1.4142135, %v393_v55  ;;  %v403_v17 = vsel %vm1526_vm10, %v1416_v9, %v399_v20 }
  0xc2   :  { %2216 = vst [vmem:[#allocation36_spill] sm:$0xff] %v1547_v19  ;;  %v417_v45 = vmul.f32 0.5, %v416_v40  ;;  %v311_v52 = vmul.f32 1.4142135, %v223_v49  ;;  %v545_v49 = vmul.f32 1.4142135, %v403_v17  ;;  %vm421_vm14 = vweird.f32 %v1489_v60 }
  0xc3   :  { %v357_v6 = vpop.xlane.xlu2 %356  ;;  %v355_v28 = vpop.xlane.xlu1 %354  ;;  %v407_v7 = vmul.f32 0.5, %v406_v50  ;;  %v428_v55 = vsub.f32 1.5, %v427_v56  ;;  %vm460_vm15 = vweird.f32 %v1471_v59  ;;  %vm1598_vm1 = vmor %vm420_vm11, %vm421_vm14  ;;  %vm411_vm5 = vweird.f32 %v1506_v10 }
  0xc4   :  { %v1550_v23 = vpop.eup %964  ;;  %v1552_v29 = vmax.f32 %v357_v6, 1e-24  ;;  %v1554_v11 = vmax.f32 %v355_v28, 1e-24  ;;  %v353_v43 = vpop.xlane.xlu0 %352  ;;  %v298_v28 = vsub.f32 1.5, %v297_v3  ;;  %v418_v54 = vsub.f32 1.5, %v417_v45  ;;  %vm1658_vm14 = vmor %vm410_vm0, %vm411_vm5 }
  0xc5   :  { %v455_v1 = vmul.f32 %v1550_v23, %v1471_v59  ;;  %v1565_v40 = vpop.eup %966  ;;  %v1575_v0 = vmax.f32 %v353_v43, 1e-24  ;;  %v576_v3 = vmul.f32 %v544_v14, %v1176_v31  ;;  %v577_v47 = vmul.f32 %v545_v49, %v1174_v30 }
  0xc6   :  { %970 = vrsqrt.f32 %v1552_v29  ;;  %v445_v20 = vmul.f32 %v1565_v40, %v1473_v44  ;;  %v1572_v6 = vpop.eup %968  ;;  %v1587_v56 = vmul.f32 %v1445_v41, %v298_v28  ;;  %v419_v14 = vmul.f32 %v1489_v60, %v418_v54 }
  0xc7   :  { %v456_v9 = vmul.f32 %v1550_v23, %v455_v1  ;;  %972 = vrsqrt.f32 %v1554_v11  ;;  %v435_v45 = vmul.f32 %v1572_v6, %v1518_v26  ;;  %v408_v1 = vsub.f32 1.5, %v407_v7 }
  0xc8   :  { %v446_v50 = vmul.f32 %v1565_v40, %v445_v20  ;;  %974 = vrsqrt.f32 %v1575_v0  ;;  %v592_v43 = vmul.f32 %v576_v3, %v1333_v34  ;;  %v429_v7 = vmul.f32 %v1468_v62, %v428_v55 }
  0xc9   :  { %v457_v17 = vmul.f32 0.5, %v456_v9  ;;  %v436_v28 = vmul.f32 %v1572_v6, %v435_v45  ;;  %vm461_vm6 = vweird.f32 %v1550_v23  ;;  %v1622_v55 = vmul.f32 %v311_v52, %v1162_v13 }
  0xca   :  { %v447_v31 = vmul.f32 0.5, %v446_v50  ;;  %608 = vadd.xlane.f32.xlu2 %v592_v43  ;;  %v409_v50 = vmul.f32 %v1506_v10, %v408_v1  ;;  %vm450_vm7 = vweird.f32 %v1473_v44  ;;  %v593_v45 = vmul.f32 %v577_v47, %v1336_v35  ;;  %vm1676_vm5 = vmor %vm460_vm15, %vm461_vm6 }
  0xcb   :  { %v363_v20 = vpop.xlane.xlu2 %362  ;;  %v361_v19 = vpop.xlane.xlu1 %360  ;;  %v458_v8 = vsub.f32 1.5, %v457_v17  ;;  %v423_v13 = vsel %vm1598_vm1, %v1489_v60, %v419_v14  ;;  %v437_v1 = vmul.f32 0.5, %v436_v28  ;;  %v433_v47 = vsel %vm1613_vm4, %v1468_v62, %v429_v7  ;;  %vm1709_vm15 = vmor %vm200_vm2, %vm201_vm3 }
  0xcc   :  { %v1591_v32 = vpop.eup %970  ;;  %v1603_v54 = vmax.f32 %v363_v20, 1e-24  ;;  %v1605_v30 = vmax.f32 %v361_v19, 1e-24  ;;  %v359_v49 = vpop.xlane.xlu0 %358  ;;  %v448_v43 = vsub.f32 1.5, %v447_v31  ;;  %610 = vadd.xlane.f32.xlu0 %v593_v45  ;;  %vm451_vm8 = vweird.f32 %v1565_v40 }
  0xcd   :  { %v485_v19 = vmul.f32 %v1591_v32, %v1552_v29  ;;  %v1624_v3 = vpop.eup %972  ;;  %v1639_v17 = vmax.f32 %v359_v49, 1e-24  ;;  %vm251_vm11 = vweird.f32 %v1322_v22  ;;  %v459_v14 = vmul.f32 %v1550_v23, %v458_v8  ;;  %vm1724_vm2 = vmor %vm450_vm7, %vm451_vm8 }
  0xce   :  { %976 = vrsqrt.f32 %v1603_v54  ;;  %v475_v34 = vmul.f32 %v1624_v3, %v1554_v11  ;;  %v1636_v52 = vpop.eup %974  ;;  %vm440_vm12 = vweird.f32 %v1518_v26  ;;  %vm441_vm13 = vweird.f32 %v1572_v6 }
  0xcf   :  { %v486_v20 = vmul.f32 %v1591_v32, %v485_v19  ;;  %978 = vrsqrt.f32 %v1605_v30  ;;  %v465_v60 = vmul.f32 %v1636_v52, %v1575_v0  ;;  %v547_v62 = vmul.f32 1.4142135, %v423_v13 }
  0xd0   :  { %v476_v19 = vmul.f32 %v1624_v3, %v475_v34  ;;  %980 = vrsqrt.f32 %v1639_v17  ;;  %v1663_v7 = vmul.f32 %v1565_v40, %v448_v43  ;;  %vm490_vm1 = vweird.f32 %v1552_v29 }
  0xd1   :  { %v487_v31 = vmul.f32 0.5, %v486_v20  ;;  %vm491_vm4 = vweird.f32 %v1591_v32  ;;  %v466_v28 = vmul.f32 %v1636_v52, %v465_v60  ;;  %v548_v12 = vmul.f32 1.4142135, %v433_v47 }
  0xd2   :  { %v477_v9 = vmul.f32 0.5, %v476_v19  ;;  %v438_v45 = vsub.f32 1.5, %v437_v1  ;;  %v579_v43 = vmul.f32 %v547_v62, %v1184_v37  ;;  %v413_v20 = vsel %vm1658_vm14, %v1506_v10, %v409_v50  ;;  %vm1749_vm14 = vmor %vm440_vm12, %vm441_vm13 }
  0xd3   :  { %v367_v49 = vpop.xlane.xlu1 %366  ;;  %v488_v47 = vsub.f32 1.5, %v487_v31  ;;  %vm480_vm10 = vweird.f32 %v1554_v11  ;;  %vm481_vm0 = vweird.f32 %v1624_v3  ;;  %v467_v19 = vmul.f32 0.5, %v466_v28 }
  0xd4   :  { %v1668_v8 = vpop.eup %976  ;;  %v1684_v13 = vmax.f32 %v367_v49, 1e-24  ;;  %v478_v37 = vsub.f32 1.5, %v477_v9  ;;  %v595_v10 = vmul.f32 %v579_v43, %v1423_v48  ;;  %v580_v50 = vmul.f32 %v548_v12, %v1182_v36 }
  0xd5   :  { %v515_v59 = vmul.f32 %v1668_v8, %v1603_v54  ;;  %v1690_v60 = vpop.eup %978  ;;  %v546_v1 = vmul.f32 1.4142135, %v413_v20  ;;  %v468_v31 = vsub.f32 1.5, %v467_v19  ;;  %v463_v28 = vsel %vm1676_vm5, %v1550_v23, %v459_v14  ;;  %v2247_v19 = vld [vmem:[#allocation18_spill] sm:$0xff] }
  0xd6   :  { %v505_v34 = vmul.f32 %v1690_v60, %v1605_v30  ;;  %v1703_v49 = vpop.eup %980  ;;  %v439_v9 = vmul.f32 %v1572_v6, %v438_v45  ;;  %614 = vadd.xlane.f32.xlu2 %v595_v10  ;;  %v596_v12 = vmul.f32 %v580_v50, %v1487_v33  ;;  %982 = vrsqrt.f32 %v1684_v13 }
  0xd7   :  { %v516_v62 = vmul.f32 %v1668_v8, %v515_v59  ;;  %v578_v23 = vmul.f32 %v546_v1, %v1186_v38  ;;  %vm240_vm5 = vweird.f32 %v1292_v4  ;;  %v1729_v14 = vmul.f32 %v1591_v32, %v488_v47 }
  0xd8   :  { %v506_v38 = vmul.f32 %v1690_v60, %v505_v34  ;;  %v495_v45 = vmul.f32 %v1703_v49, %v1639_v17  ;;  %v1736_v43 = vmul.f32 %v1624_v3, %v478_v37  ;;  %v1739_v44 = vmul.f32 %v1636_v52, %v468_v31  ;;  %616 = vadd.xlane.f32.xlu0 %v596_v12  ;;  %v2238_v34 = vld [vmem:[#allocation15_spill] sm:$0xff] }
  0xd9   :  { %v517_v16 = vmul.f32 0.5, %v516_v62  ;;  %vm521_vm8 = vweird.f32 %v1668_v8  ;;  %v594_v20 = vmul.f32 %v578_v23, %v1452_v57  ;;  %v551_v47 = vmul.f32 1.4142135, %v463_v28  ;;  %v986_v12 = vld [vmem:[#allocation2 + $0x48] sm:$0xff] }
  0xda   :  { %vm470_vm6 = vweird.f32 %v1575_v0  ;;  %v507_v37 = vmul.f32 0.5, %v506_v38  ;;  %v496_v10 = vmul.f32 %v1703_v49, %v495_v45  ;;  %v2231_v50 = vsel %vm1512_vm9, %v1297_v24, %v1412_v18  ;;  %v2235_v18 = vld [vmem:[#allocation26_spill] sm:$0xff] }
  0xdb   :  { %v518_v59 = vsub.f32 1.5, %v517_v16  ;;  %v310_v1 = vmul.f32 1.4142135, %v2231_v50  ;;  %vm510_vm3 = vweird.f32 %v1605_v30  ;;  %vm511_vm7 = vweird.f32 %v1690_v60  ;;  %612 = vadd.xlane.f32.xlu1 %v594_v20  ;;  %v2245_v16 = vld [vmem:[#allocation17_spill] sm:$0xff]  ;;  %v2246_v20 = vld [vmem:[#allocation14_spill] sm:$0xff] }
  0xdc   :  { %v583_v26 = vmul.f32 %v551_v47, %v1194_v42  ;;  %v453_v31 = vsel %vm1724_vm2, %v1565_v40, %v1663_v7  ;;  %v203_v39 = vsel %vm1709_vm15, %v1269_v58, %v1387_v2  ;;  %v443_v24 = vsel %vm1749_vm14, %v1572_v6, %v439_v9  ;;  %v1787_v2 = vpop.eup %982  ;;  %v2252_v50 = vld [vmem:[#allocation33_spill] sm:$0xff] }
  0xdd   :  { %vm2232_vm9 = vweird.f32 %v1272_v61  ;;  %vm270_vm13 = vweird.f32 %v2235_v18  ;;  %v1784_v40 = vmul.f32 %v1668_v8, %v518_v59  ;;  %v508_v7 = vsub.f32 1.5, %v507_v37  ;;  %v2265_v61 = vld [vmem:[#allocation16_spill] sm:$0xff] }
  0xde   :  { %vm1778_vm12 = vmor %vm2232_vm9, %vm251_vm11  ;;  %v497_v62 = vmul.f32 0.5, %v496_v10  ;;  %v550_v58 = vmul.f32 1.4142135, %v453_v31  ;;  %v599_v6 = vmul.f32 %v583_v26, %v1622_v55  ;;  %v1800_v28 = vmul.f32 %v310_v1, %v2238_v34  ;;  %v2256_v31 = vld [vmem:[#allocation29_spill] sm:$0xff] }
  0xdf   :  { %vm1793_vm11 = vmor %vm490_vm1, %vm491_vm4  ;;  %v309_v36 = vmul.f32 1.4142135, %v203_v39  ;;  %v549_v9 = vmul.f32 1.4142135, %v443_v24  ;;  %vm2239_vm2 = vweird.f32 %v1277_v63  ;;  %vm2240_vm9 = vweird.f32 %v1247_v27 }
  0xe0   :  { %vm1806_vm15 = vmor %vm2240_vm9, %vm2239_vm2  ;;  %v1811_v29 = vmul.f32 %v1690_v60, %v508_v7  ;;  %v498_v23 = vsub.f32 1.5, %v497_v62  ;;  %vm500_vm1 = vweird.f32 %v1639_v17  ;;  %v535_v21 = vmul.f32 %v1787_v2, %v1684_v13  ;;  %622 = vadd.xlane.f32.xlu0 %v599_v6  ;;  %v2261_v7 = vld [vmem:[#allocation34_spill] sm:$0xff] }
  0xe1   :  { %vm1822_vm2 = vmor %vm480_vm10, %vm481_vm0  ;;  %v582_v38 = vmul.f32 %v550_v58, %v2245_v16  ;;  %v885_v45 = vpack.c.bf16 %v1622_v55, %v1800_v28  ;;  %v1830_v47 = vmul.f32 %v309_v36, %v2246_v20  ;;  %v581_v59 = vmul.f32 %v549_v9, %v2247_v19  ;;  %v2266_v36 = vld [vmem:[#allocation30_spill] sm:$0xff]  ;;  %v2270_v9 = vld [vmem:[#allocation19_spill] sm:$0xff] }
  0xe2   :  { %vm2248_vm9 = vweird.f32 %v1310_v51  ;;  %vm2249_vm14 = vweird.f32 %v1267_v53  ;;  %v1842_v37 = vmul.f32 %v1703_v49, %v498_v23  ;;  %v536_v10 = vmul.f32 %v1787_v2, %v535_v21  ;;  %v2271_v16 = vld [vmem:[#allocation25_spill] sm:$0xff] }
  0xe3   :  { %vm1837_vm4 = vmor %vm2249_vm14, %vm2248_vm9  ;;  %v253_v1 = vsel %vm1778_vm12, %v1322_v22, %v2252_v50  ;;  %v493_v26 = vsel %vm1793_vm11, %v1591_v32, %v1729_v14  ;;  %vm2253_vm10 = vweird.f32 %v1327_v25  ;;  %vm300_vm14 = vweird.f32 %v2256_v31  ;;  %909 = vst [vmem:[#allocation7 + $0x18] sm:$0xff] %v885_v45   ;;  %v2276_v45 = vld [vmem:[#allocation20_spill] sm:$0xff]  ;;  %v987_v50 = vld [vmem:[#allocation2 + $0x40] sm:$0xff] }
  0xe4   :  { %vm1857_vm0 = vmor %vm240_vm5, %vm2253_vm10  ;;  %v598_v39 = vmul.f32 %v582_v38, %v1800_v28  ;;  %v597_v22 = vmul.f32 %v581_v59, %v1830_v47  ;;  %v880_v24 = vpack.c.bf16 %v1830_v47, %v1487_v33  ;;  %v314_v32 = vmul.f32 1.4142135, %v253_v1  ;;  %v2277_v59 = vld [vmem:[#allocation35_spill] sm:$0xff]  ;;  %v2283_v53 = vld [vmem:[#allocation21_spill] sm:$0xff] }
  0xe5   :  { %vm2257_vm12 = vweird.f32 %v1376_v46  ;;  %vm2258_vm11 = vweird.f32 %v1317_v5  ;;  %v537_v14 = vmul.f32 0.5, %v536_v10  ;;  %v554_v42 = vmul.f32 1.4142135, %v493_v26  ;;  %v2294_v31 = vld [vmem:[#allocation27_spill] sm:$0xff] }
  0xe6   :  { %vm1870_vm5 = vmor %vm2258_vm11, %vm2257_vm12  ;;  %v243_v62 = vsel %vm1857_vm0, %v1327_v25, %v2261_v7  ;;  %v483_v58 = vsel %vm1822_vm2, %v1624_v3, %v1736_v43  ;;  %vm2262_vm9 = vweird.f32 %v1636_v52  ;;  %620 = vadd.xlane.f32.xlu2 %v598_v39  ;;  %908 = vst [vmem:[#allocation7 + $0x10] sm:$0xff] %v880_v24   ;;  %618 = vadd.xlane.f32.xlu1 %v597_v22  ;;  %vm290_vm0 = vweird.f32 %v2271_v16  ;;  %v2284_v24 = vld [vmem:[#allocation36_spill] sm:$0xff] }
  0xe7   :  { %vm1886_vm10 = vmor %vm470_vm6, %vm2262_vm9  ;;  %v1891_v6 = vmul.f32 %v314_v32, %v2265_v61  ;;  %v313_v25 = vmul.f32 1.4142135, %v243_v62  ;;  %v553_v34 = vmul.f32 1.4142135, %v483_v58  ;;  %v233_v3 = vsel %vm1806_vm15, %v1277_v63, %v2266_v36  ;;  %v2272_v63 = vld [vmem:[#allocation28_spill] sm:$0xff] }
  0xe8   :  { %vm2267_vm6 = vweird.f32 %v1603_v54  ;;  %v538_v43 = vsub.f32 1.5, %v537_v14  ;;  %v586_v23 = vmul.f32 %v554_v42, %v2270_v9  ;;  %v312_v21 = vmul.f32 1.4142135, %v233_v3  ;;  %vm1931_vm11 = vmor %vm510_vm3, %vm511_vm7  ;;  %v988_v42 = vld [vmem:[#allocation2 + $0x68] sm:$0xff]  ;;  %v2297_v54 = vld [vmem:[#allocation24_spill] sm:$0xff] }
  0xe9   :  { %vm1901_vm2 = vmor %vm2267_vm6, %vm521_vm8  ;;  %v473_v27 = vsel %vm1886_vm10, %v1636_v52, %v1739_v44  ;;  %vm291_vm15 = vweird.f32 %v2272_v63  ;;  %vm2273_vm12 = vweird.f32 %v1380_v15  ;;  %v1920_v38 = vmul.f32 %v986_v12, %v313_v25  ;;  %v989_v25 = vld [vmem:[#allocation2 + $0x60] sm:$0xff] }
  0xea   :  { %vm1916_vm8 = vmor %vm270_vm13, %vm2273_vm12  ;;  %v585_v20 = vmul.f32 %v553_v34, %v2276_v45  ;;  %v552_v19 = vmul.f32 1.4142135, %v473_v27  ;;  %v283_v52 = vsel %vm1870_vm5, %v1376_v46, %v2277_v59  ;;  %v539_v18 = vmul.f32 %v1787_v2, %v538_v43  ;;  %v2296_v43 = vld [vmem:[#allocation23_spill] sm:$0xff] }
  0xeb   :  { %v602_v10 = vmul.f32 %v586_v23, %v1891_v6  ;;  %v1937_v1 = vmul.f32 %v987_v50, %v312_v21  ;;  %v317_v26 = vmul.f32 1.4142135, %v283_v52  ;;  %vm2280_vm13 = vweird.f32 %v1703_v49  ;;  %v990_v21 = vld [vmem:[#allocation2 + $0x58] sm:$0xff] }
  0xec   :  { %vm1943_vm5 = vmor %vm500_vm1, %vm2280_vm13  ;;  %v601_v30 = vmul.f32 %v585_v20, %v1920_v38  ;;  %v584_v39 = vmul.f32 %v552_v19, %v2283_v53  ;;  %v523_v22 = vsel %vm1901_vm2, %v1668_v8, %v1784_v40  ;;  %v273_v32 = vsel %vm1916_vm8, %v1380_v15, %v2284_v24  ;;  %v2299_v20 = vld [vmem:[#allocation32_spill] sm:$0xff] }
  0xed   :  { %vm2285_vm3 = vweird.f32 %v1787_v2  ;;  %vm2286_vm7 = vweird.f32 %v1684_v13  ;;  %v890_v4 = vpack.c.bf16 %v1920_v38, %v1937_v1  ;;  %v557_v14 = vmul.f32 1.4142135, %v523_v22  ;;  %628 = vadd.xlane.f32.xlu0 %v602_v10  ;;  %v2289_v13 = vld [vmem:[#allocation31_spill] sm:$0xff]  ;;  %v992_v22 = vld [vmem:[#allocation5 + $0x78] sm:$0xff] }
  0xee   :  { %vm1961_vm1 = vmor %vm2286_vm7, %vm2285_vm3  ;;  %v1967_v7 = vmul.f32 %v988_v42, %v317_v26  ;;  %v316_v8 = vmul.f32 1.4142135, %v273_v32  ;;  %v600_v40 = vmul.f32 %v584_v39, %v1937_v1  ;;  %v513_v15 = vsel %vm1931_vm11, %v1690_v60, %v1811_v29  ;;  %v2293_v60 = vld [vmem:[#allocation22_spill] sm:$0xff]  ;;  %626 = vadd.xlane.f32.xlu2 %v601_v30  ;;  %v991_v26 = vld [vmem:[#allocation2 + $0x78] sm:$0xff] }
  0xef   :  { %v263_v62 = vsel %vm1837_vm4, %v1310_v51, %v2289_v13  ;;  %v503_v58 = vsel %vm1943_vm5, %v1703_v49, %v1842_v37  ;;  %vm2290_vm9 = vweird.f32 %v1445_v41  ;;  %910 = vst [vmem:[#allocation7 + $0x20] sm:$0xff] %v890_v4   ;;  %v589_v29 = vmul.f32 %v557_v14, %v2293_v60  ;;  %vm2025_vm4 = vmor %vm290_vm0, %vm291_vm15  ;;  %v993_v60 = vld [vmem:[#allocation2 + $0x70] sm:$0xff] }
  0xf0   :  { %vm1986_vm10 = vmor %vm300_vm14, %vm2290_vm9  ;;  %v556_v61 = vmul.f32 1.4142135, %v513_v15  ;;  %v572_v11 = vmul.f32 %v989_v25, %v316_v8  ;;  %v315_v51 = vmul.f32 1.4142135, %v263_v62  ;;  %624 = vadd.xlane.f32.xlu1 %v600_v40  ;;  %v555_v34 = vmul.f32 1.4142135, %v503_v58 }
  0xf1   :  { %v303_v49 = vsel %vm1986_vm10, %v1445_v41, %v1587_v56  ;;  %v543_v37 = vsel %vm1961_vm1, %v1787_v2, %v539_v18  ;;  %v2295_v36 = vpack.c.bf16 %v2294_v31, %v2294_v31  ;;  %v605_v0 = vmul.f32 %v589_v29, %v1967_v7 }
  0xf2   :  { %v588_v9 = vmul.f32 %v556_v61, %v2296_v43  ;;  %v900_v23 = vpack.c.bf16 %v1967_v7, %v572_v11  ;;  %v571_v27 = vmul.f32 %v990_v21, %v315_v51  ;;  %v587_v12 = vmul.f32 %v555_v34, %v2297_v54 }
  0xf3   :  { %v2001_v3 = vunpack.c.l.b16 %v2295_v36  ;;  %v319_v41 = vmul.f32 1.4142135, %v303_v49  ;;  %v559_v56 = vmul.f32 1.4142135, %v543_v37  ;;  %v2298_v2 = vpack.c.bf16 %v1336_v35, %v1336_v35 }
  0xf4   :  { %v2300_v19 = vsub.f32 1.5, %v2299_v20  ;;  %912 = vst [vmem:[#allocation7 + $0x30] sm:$0xff] %v900_v23   ;;  %v895_v52 = vpack.c.bf16 %v571_v27, %v1891_v6  ;;  %v659_v44 = vpack.c.bf16 %v1452_v57, %v1452_v57  ;;  %v660_v18 = vpack.c.bf16 %v1423_v48, %v1423_v48 }
  0xf5   :  { %v706_v45 = vunpack.c.l.b16 %v2298_v2  ;;  %v604_v10 = vmul.f32 %v588_v9, %v572_v11  ;;  %v603_v50 = vmul.f32 %v587_v12, %v571_v27  ;;  %v2018_v46 = vmul.f32 %v991_v26, %v319_v41  ;;  %634 = vadd.xlane.f32.xlu0 %v605_v0 }
  0xf6   :  { %v289_v59 = vmul.f32 %v2272_v63, %v2300_v19  ;;  %911 = vst [vmem:[#allocation7 + $0x28] sm:$0xff] %v895_v52   ;;  %v707_v57 = vunpack.c.l.b16 %v659_v44  ;;  %v708_v53 = vunpack.c.l.b16 %v660_v18  ;;  %v661_v48 = vpack.c.bf16 %v1487_v33, %v1487_v33  ;;  %v994_v18 = vld [vmem:[#allocation5 + $0x70] sm:$0xff] }
  0xf7   :  { %v721_v35 = vpack.c.b16 %v706_v45, %v2001_v3  ;;  %v662_v39 = vpack.c.bf16 %v1830_v47, %v1830_v47  ;;  %v591_v24 = vmul.f32 %v992_v22, %v559_v56  ;;  %v663_v32 = vpack.c.bf16 %v1800_v28, %v1800_v28  ;;  %632 = vadd.xlane.f32.xlu2 %v604_v10 }
  0xf8   :  { %v664_v16 = vpack.c.bf16 %v1622_v55, %v1622_v55  ;;  %v665_v17 = vpack.c.bf16 %v1937_v1, %v1937_v1  ;;  %v722_v4 = vpack.c.b16 %v708_v53, %v707_v57  ;;  %v709_v14 = vunpack.c.l.b16 %v661_v48  ;;  %630 = vadd.xlane.f32.xlu1 %v603_v50 }
  0xf9   :  { %v710_v42 = vunpack.c.l.b16 %v662_v39  ;;  %v666_v33 = vpack.c.bf16 %v1920_v38, %v1920_v38  ;;  %v711_v47 = vunpack.c.l.b16 %v663_v32  ;;  %v293_v28 = vsel %vm2025_vm4, %v2272_v63, %v289_v59 }
  0xfa   :  { %v712_v8 = vunpack.c.l.b16 %v664_v16  ;;  %v2041_v40 = vunpack.c.l.b16 %v665_v17  ;;  %v318_v1 = vmul.f32 1.4142135, %v293_v28  ;;  %v669_v13 = vpack.c.bf16 %v572_v11, %v572_v11 }
  0xfb   :  { %v723_v55 = vpack.c.b16 %v710_v42, %v709_v14  ;;  %v2046_v15 = vunpack.c.l.b16 %v666_v33  ;;  %v607_v62 = vmul.f32 %v591_v24, %v2018_v46  ;;  %v670_v38 = vpack.c.bf16 %v1967_v7, %v1967_v7 }
  0xfc   :  { %v724_v58 = vpack.c.b16 %v712_v8, %v711_v47  ;;  %v2053_v29 = vmul.f32 %v993_v60, %v318_v1  ;;  %v2055_v61 = vunpack.c.l.b16 %v669_v13  ;;  %v667_v7 = vpack.c.bf16 %v1891_v6, %v1891_v6 }
  0xfd   :  { %v725_v5 = vpack.c.b16 %v2046_v15, %v2041_v40  ;;  %v2057_v63 = vunpack.c.l.b16 %v670_v38  ;;  %638 = vadd.xlane.f32.xlu0 %v607_v62  ;;  %v668_v51 = vpack.c.bf16 %v571_v27, %v571_v27  ;;  %vm640_vm14 = vcmask 7168  }
  0xfe   :  { %v905_v25 = vpack.c.bf16 %v2018_v46, %v2053_v29  ;;  %v715_v34 = vunpack.c.l.b16 %v667_v7  ;;  %v671_v53 = vpack.c.bf16 %v2053_v29, %v2053_v29  ;;  %v672_v48 = vpack.c.bf16 %v2018_v46, %v2018_v46 }
  0xff   :  { %v727_v11 = vpack.c.b16 %v2057_v63, %v2055_v61  ;;  %v716_v49 = vunpack.c.l.b16 %v668_v51 }
 0x100   :  { %913 = vst [vmem:[#allocation7 + $0x38] sm:$0xff] %v905_v25   ;;  %v719_v39 = vunpack.c.l.b16 %v671_v53  ;;  %v720_v22 = vunpack.c.l.b16 %v672_v48 }
 0x101   :  { %v726_v37 = vpack.c.b16 %v716_v49, %v715_v34  ;;  %837 = dma.vmem_to_hbm [thread:$0]  %s830_s5, 1024, %s832_s29, [#allocation4], %s1104_s6, %s1104_s6, %s1105_s7  }
 0x102   :  { %v728_v24 = vpack.c.b16 %v720_v22, %v719_v39 }
 0x10c   :  { %v365_v31 = vpop.xlane.xlu0 %364 }
 0x10d   :  { %v382_v36 = vmax.f32 %v365_v31, 1e-24 }
 0x10f   :  { %984 = vrsqrt.f32 %v382_v36  ;;  %vm530_vm6 = vweird.f32 %v382_v36 }
 0x115   :  { %v985_v6 = vpop.eup %984 }
 0x116   :  { %v525_v43 = vmul.f32 %v985_v6, %v382_v36  ;;  %vm531_vm2 = vweird.f32 %v985_v6 }
 0x117   :  { %vm532_vm0 = vmor %vm530_vm6, %vm531_vm2 }
 0x118   :  { %v526_v21 = vmul.f32 %v985_v6, %v525_v43 }
 0x11a   :  { %v527_v54 = vmul.f32 0.5, %v526_v21 }
 0x11c   :  { %v528_v41 = vsub.f32 1.5, %v527_v54 }
 0x11e   :  { %v529_v45 = vmul.f32 %v985_v6, %v528_v41 }
 0x120   :  { %v533_v19 = vsel %vm532_vm0, %v985_v6, %v529_v45 }
 0x121   :  { %v558_v44 = vmul.f32 1.4142135, %v533_v19 }
 0x123   :  { %v590_v10 = vmul.f32 %v994_v18, %v558_v44 }
 0x125   :  { %v606_v50 = vmul.f32 %v590_v10, %v2053_v29 }
 0x127   :  { %636 = vadd.xlane.f32.xlu2 %v606_v50 }
 0x132   :  { %737 = vxpose.xlu1.c.b16.start [1/8] %v721_v35, 128 }
 0x13d   :  { %v609_v3 = vpop.xlane.xlu2 %608 }
 0x13e   :  { %641 = vst.msk [vmem:[%s2153_s4] sm:$0xff] %vm640_vm14, %v609_v3 }
 0x13f   :  { %v611_v0 = vpop.xlane.xlu0 %610 }
 0x140   :  { %642 = vst.msk [vmem:[%s2153_s4 + $0x8] sm:$0xff] %vm640_vm14, %v611_v0 }
 0x142   :  { %738 = vxpose.xlu1.c.b16.cont [2/8] %v722_v4, 128 }
 0x149   :  { %v615_v9 = vpop.xlane.xlu2 %614 }
 0x14a   :  { %644 = vst.msk [vmem:[%s2153_s4 + $0x18] sm:$0xff] %vm640_vm14, %v615_v9 }
 0x14b   :  { %v617_v23 = vpop.xlane.xlu0 %616 }
 0x14c   :  { %645 = vst.msk [vmem:[%s2153_s4 + $0x20] sm:$0xff] %vm640_vm14, %v617_v23 }
 0x14e   :  { %v613_v27 = vpop.xlane.xlu1 %612 }
 0x14f   :  { %643 = vst.msk [vmem:[%s2153_s4 + $0x10] sm:$0xff] %vm640_vm14, %v613_v27 }
 0x152   :  { %739 = vxpose.xlu1.c.b16.cont [3/8] %v723_v55, 128 }
 0x153   :  { %v623_v12 = vpop.xlane.xlu0 %622 }
 0x154   :  { %648 = vst.msk [vmem:[%s2153_s4 + $0x38] sm:$0xff] %vm640_vm14, %v623_v12 }
 0x159   :  { %v621_v56 = vpop.xlane.xlu2 %620  ;;  %v619_v2 = vpop.xlane.xlu1 %618 }
 0x15a   :  { %647 = vst.msk [vmem:[%s2153_s4 + $0x30] sm:$0xff] %vm640_vm14, %v621_v56 }
 0x15b   :  { %646 = vst.msk [vmem:[%s2153_s4 + $0x28] sm:$0xff] %vm640_vm14, %v619_v2 }
 0x160   :  { %v629_v20 = vpop.xlane.xlu0 %628 }
 0x161   :  { %651 = vst.msk [vmem:[%s2153_s4 + $0x50] sm:$0xff] %vm640_vm14, %v629_v20  ;;  %v627_v59 = vpop.xlane.xlu2 %626 }
 0x162   :  { %740 = vxpose.xlu1.c.b16.cont [4/8] %v724_v58, 128  ;;  %650 = vst.msk [vmem:[%s2153_s4 + $0x48] sm:$0xff] %vm640_vm14, %v627_v59 }
 0x163   :  { %v625_v52 = vpop.xlane.xlu1 %624 }
 0x164   :  { %649 = vst.msk [vmem:[%s2153_s4 + $0x40] sm:$0xff] %vm640_vm14, %v625_v52 }
 0x168   :  { %v635_v26 = vpop.xlane.xlu0 %634 }
 0x169   :  { %654 = vst.msk [vmem:[%s2153_s4 + $0x68] sm:$0xff] %vm640_vm14, %v635_v26 }
 0x16a   :  { %v633_v35 = vpop.xlane.xlu2 %632 }
 0x16b   :  { %v631_v30 = vpop.xlane.xlu1 %630  ;;  %653 = vst.msk [vmem:[%s2153_s4 + $0x60] sm:$0xff] %vm640_vm14, %v633_v35 }
 0x16c   :  { %652 = vst.msk [vmem:[%s2153_s4 + $0x58] sm:$0xff] %vm640_vm14, %v631_v30 }
 0x170   :  { %v639_v57 = vpop.xlane.xlu0 %638 }
 0x171   :  { %656 = vst.msk [vmem:[%s2153_s4 + $0x78] sm:$0xff] %vm640_vm14, %v639_v57 }
 0x172   :  { %741 = vxpose.xlu1.c.b16.cont [5/8] %v725_v5, 128 }
 0x182   :  { %742 = vxpose.xlu1.c.b16.cont [6/8] %v726_v37, 128 }
 0x192   :  { %743 = vxpose.xlu1.c.b16.cont [7/8] %v727_v11, 128 }
 0x19a   :  { %v637_v32 = vpop.xlane.xlu2 %636 }
 0x19b   :  { %655 = vst.msk [vmem:[%s2153_s4 + $0x70] sm:$0xff] %vm640_vm14, %v637_v32  ;;  %s842_s4 = sshll.u32 %s1106_s2, 4  ;;  %s843_s4 = int_to_ptr.vmem [resolvable:$true] %s842_s4 }
 0x1a2   :  { %744 = vxpose.xlu1.c.b16.end [8/8] %v728_v24, 128 }
 0x1de   :  { %v745_v46 = vpop.trf.xlu1 }
 0x1df   :  { %v761_v16 = vunpack.c.l.b16 %v745_v46  ;;  %v762_v17 = vunpack.c.h.b16 %v745_v46 }
 0x1e1   :  { %v777_v4 = vpack.c.b16 %v761_v16, %v761_v16  ;;  %v778_v14 = vpack.c.b16 %v762_v17, %v762_v17 }
 0x1e3   :  { %809 = vst [vmem:[#allocation8] sm:$0xf] %v777_v4 }
 0x1e4   :  { %810 = vst [vmem:[#allocation8 + $0x4] sm:$0xf] %v778_v14 }
 0x1ee   :  { %v746_v42 = vpop.trf.xlu1 }
 0x1ef   :  { %v763_v33 = vunpack.c.l.b16 %v746_v42  ;;  %v764_v47 = vunpack.c.h.b16 %v746_v42 }
 0x1f1   :  { %v779_v8 = vpack.c.b16 %v763_v33, %v763_v33  ;;  %v780_v40 = vpack.c.b16 %v764_v47, %v764_v47 }
 0x1f3   :  { %811 = vst [vmem:[#allocation8 + $0x8] sm:$0xf] %v779_v8 }
 0x1f4   :  { %812 = vst [vmem:[#allocation8 + $0xc] sm:$0xf] %v780_v40 }
 0x1fe   :  { %v747_v28 = vpop.trf.xlu1 }
 0x1ff   :  { %v765_v55 = vunpack.c.l.b16 %v747_v28  ;;  %v766_v15 = vunpack.c.h.b16 %v747_v28 }
 0x201   :  { %v781_v1 = vpack.c.b16 %v765_v55, %v765_v55  ;;  %v782_v13 = vpack.c.b16 %v766_v15, %v766_v15 }
 0x203   :  { %813 = vst [vmem:[#allocation8 + $0x10] sm:$0xf] %v781_v1 }
 0x204   :  { %814 = vst [vmem:[#allocation8 + $0x14] sm:$0xf] %v782_v13 }
 0x20e   :  { %v748_v62 = vpop.trf.xlu1 }
 0x20f   :  { %v767_v58 = vunpack.c.l.b16 %v748_v62  ;;  %v768_v38 = vunpack.c.h.b16 %v748_v62 }
 0x211   :  { %v783_v5 = vpack.c.b16 %v767_v58, %v767_v58  ;;  %v784_v60 = vpack.c.b16 %v768_v38, %v768_v38 }
 0x213   :  { %815 = vst [vmem:[#allocation8 + $0x18] sm:$0xf] %v783_v5 }
 0x214   :  { %816 = vst [vmem:[#allocation8 + $0x1c] sm:$0xf] %v784_v60 }
 0x21e   :  { %v749_v29 = vpop.trf.xlu1 }
 0x21f   :  { %v769_v61 = vunpack.c.l.b16 %v749_v29  ;;  %v770_v63 = vunpack.c.h.b16 %v749_v29 }
 0x221   :  { %v785_v25 = vpack.c.b16 %v769_v61, %v769_v61  ;;  %v786_v11 = vpack.c.b16 %v770_v63, %v770_v63 }
 0x223   :  { %817 = vst [vmem:[#allocation8 + $0x20] sm:$0xf] %v785_v25 }
 0x224   :  { %818 = vst [vmem:[#allocation8 + $0x24] sm:$0xf] %v786_v11 }
 0x22e   :  { %v750_v7 = vpop.trf.xlu1 }
 0x22f   :  { %v771_v51 = vunpack.c.l.b16 %v750_v7  ;;  %v772_v34 = vunpack.c.h.b16 %v750_v7 }
 0x231   :  { %v787_v49 = vpack.c.b16 %v771_v51, %v771_v51  ;;  %v788_v37 = vpack.c.b16 %v772_v34, %v772_v34 }
 0x233   :  { %819 = vst [vmem:[#allocation8 + $0x28] sm:$0xf] %v787_v49 }
 0x234   :  { %820 = vst [vmem:[#allocation8 + $0x2c] sm:$0xf] %v788_v37 }
 0x23e   :  { %v751_v31 = vpop.trf.xlu1 }
 0x23f   :  { %v773_v36 = vunpack.c.l.b16 %v751_v31  ;;  %v774_v3 = vunpack.c.h.b16 %v751_v31 }
 0x241   :  { %v789_v0 = vpack.c.b16 %v773_v36, %v773_v36  ;;  %v790_v6 = vpack.c.b16 %v774_v3, %v774_v3 }
 0x243   :  { %821 = vst [vmem:[#allocation8 + $0x30] sm:$0xf] %v789_v0 }
 0x244   :  { %822 = vst [vmem:[#allocation8 + $0x34] sm:$0xf] %v790_v6 }
 0x24e   :  { %v752_v43 = vpop.trf.xlu1 }
 0x24f   :  { %v775_v9 = vunpack.c.l.b16 %v752_v43  ;;  %v776_v23 = vunpack.c.h.b16 %v752_v43 }
 0x251   :  { %v791_v21 = vpack.c.b16 %v775_v9, %v775_v9  ;;  %v792_v27 = vpack.c.b16 %v776_v23, %v776_v23 }
 0x253   :  { %823 = vst [vmem:[#allocation8 + $0x38] sm:$0xf] %v791_v21 }
 0x254   :  { %824 = vst [vmem:[#allocation8 + $0x3c] sm:$0xf] %v792_v27 }
 0x255   :  { %850 = dma.vmem_to_hbm [thread:$0]  %s843_s4, 1024, %s845_s12, [#allocation9], %s1104_s6, %s1104_s6, %s1105_s7  }
 0x256   :  { %1095 = dma.done.wait [#allocation4], 1024  }
 0x257   :  { %1096 = vsyncadd [#allocation4], 4294966272 }
 0x258   :  { %1097 = dma.done.wait [#allocation9], 1024  }
 0x259   :  { %1098 = vsyncadd [#allocation9], 4294966272 }
 0x25a   :  { %863 = vsyncpa [#allocation3], 1 }
 0x25b   :  { %864 = vsyncpa [#allocation6], 1 }
 0x25c   :  { %865 = vsyncpa [#allocation4], 1 }
 0x25d   :  { %866 = vsyncpa [#allocation9], 1 }

</bundles_post_ra>
